<compile_context>
chip_gen: v7x
topology: tpu7x:2x2x1
jax: 0.10.0
libtpu: 0.0.40
codegen_flags: <defaults>
</compile_context>

<pallas_src>
import jax
import jax.numpy as jnp
from jax.experimental import pallas as pl
from jax.experimental.pallas import tpu as pltpu


N_TRACK = 10
N_WAYPOINTS = 3
D_SIDE = N_TRACK * 2        # 20  (one side, flattened)
D_IN = N_TRACK * 4          # 40  (concatenated input width of the PyTorch model)
H1 = 256
H2 = 128
D_OUT = N_WAYPOINTS * 2     # 6
D_OUT_PAD = 8               # lane-padded output head (sliced back to 6 in wrapper)

# Matmul operand dtype (f32 accumulation always).  Set to jnp.float32 for
# bit-tight parity with the f32 PyTorch reference.
MATMUL_DTYPE = jnp.bfloat16

_MAX_TB = 4096              # ~12 MiB live VMEM incl. intermediates -> fits everywhere
_SPLIT_THRESHOLD = 2048     # below this a single step amortizes overhead best


def _mlp_kernel(xl_ref, xr_ref, w1_ref, b1_ref, w2_ref, b2_ref,
                w3_ref, b3_ref, o_ref):
    # xl/xr: (TB, 20) f32.  Weights (in, out) in MATMUL_DTYPE; biases (1, out) f32.
    # Fused layer-1 LHS: (TB, 40).  20+20 < 128 lanes -> cheap in-vreg lane shift.
    x = jnp.concatenate([xl_ref[...], xr_ref[...]], axis=-1).astype(w1_ref.dtype)
    h1 = jnp.dot(x, w1_ref[...], preferred_element_type=jnp.float32) + b1_ref[...]
    h1 = jnp.maximum(h1, 0.0)
    h2 = jnp.dot(h1.astype(w2_ref.dtype), w2_ref[...],
                 preferred_element_type=jnp.float32) + b2_ref[...]
    h2 = jnp.maximum(h2, 0.0)
    out = jnp.dot(h2.astype(w3_ref.dtype), w3_ref[...],
                  preferred_element_type=jnp.float32) + b3_ref[...]
    o_ref[...] = out.astype(o_ref.dtype)


def _pick_tb(batch):
    """Shape-based batch tile.

    Whole batch in one step up to 2048 rows; above that, ~<=4096-row tiles with
    an EVEN number of grid steps so a v7x megacore gets a balanced batch split.
    """
    if batch <= _SPLIT_THRESHOLD:
        return batch
    n_steps = max(2, pl.cdiv(batch, _MAX_TB))
    if n_steps % 2:
        n_steps += 1
    tb = pl.cdiv(batch, n_steps)
    return min(batch, ((tb + 7) // 8) * 8)   # sublane-aligned (ragged tail is masked)


def mlp_planner_forward(track_left, track_right, params):
    """track_left, track_right: (B, n_track, 2) f32 -> (B, n_waypoints, 2) f32."""
    b = track_left.shape[0]
    # Row-major reshapes are free views; no wrapper-side concat / extra HBM pass.
    xl = track_left.reshape(b, D_SIDE)
    xr = track_right.reshape(b, D_SIDE)

    w1k, b1k, w2k, b2k, w3k, b3k = params

    tb = _pick_tb(b)
    grid = (pl.cdiv(b, tb),)

    # VMEM-resident weights: constant index_map -> DMA'd once, no re-fetch.
    resident = lambda arr: pl.BlockSpec(arr.shape, lambda i: (0,) * arr.ndim)

    weight_bytes = sum(int(a.size) * a.dtype.itemsize
                       for a in (w1k, b1k, w2k, b2k, w3k, b3k))
    cost = pl.CostEstimate(
        flops=2 * b * (D_IN * H1 + H1 * H2 + H2 * D_OUT_PAD),
        transcendentals=0,
        bytes_accessed=b * (2 * D_SIDE + D_OUT_PAD) * 4 + weight_bytes,
    )

    out_padded = pl.pallas_call(
        _mlp_kernel,
        out_shape=jax.ShapeDtypeStruct((b, D_OUT_PAD), jnp.float32),
        grid=grid,
        in_specs=[
            pl.BlockSpec((tb, D_SIDE), lambda i: (i, 0)),   # xl: streamed
            pl.BlockSpec((tb, D_SIDE), lambda i: (i, 0)),   # xr: streamed
            resident(w1k), resident(b1k),
            resident(w2k), resident(b2k),
            resident(w3k), resident(b3k),
        ],
        out_specs=pl.BlockSpec((tb, D_OUT_PAD), lambda i: (i, 0)),
        compiler_params=pltpu.CompilerParams(
            dimension_semantics=("parallel",),
            vmem_limit_bytes=32 * 1024 * 1024,   # lift v5e's 16 MiB default
        ),
        cost_estimate=cost,
    )(xl, xr, w1k, b1k, w2k, b2k, w3k, b3k)

    return out_padded[:, :D_OUT].reshape(b, N_WAYPOINTS, 2)


def init_params(key, matmul_dtype=MATMUL_DTYPE):
    """Deterministic init mimicking nn.Linear (uniform +-1/sqrt(fan_in)).

    Returns BOTH the PyTorch-layout f32 params (for reference math) and the
    kernel-layout params (W1 rows permuted to [left-rows ; right-rows] and
    stacked into one (40,256) matrix, W3/b3 lane-padded 6->8, matmul weights
    cast to `matmul_dtype`, biases kept f32).
    """
    ks = jax.random.split(key, 6)

    def linear(kw, kb, fan_in, fan_out):
        bound = 1.0 / jnp.sqrt(float(fan_in))
        w = jax.random.uniform(kw, (fan_in, fan_out), jnp.float32, -bound, bound)
        bb = jax.random.uniform(kb, (1, fan_out), jnp.float32, -bound, bound)
        return w, bb

    w1, b1 = linear(ks[0], ks[1], D_IN, H1)
    w2, b2 = linear(ks[2], ks[3], H1, H2)
    w3, b3 = linear(ks[4], ks[5], H2, D_OUT)
    torch_layout = (w1, b1, w2, b2, w3, b3)

    # PyTorch input layout per track point k is [l_k0, l_k1, r_k0, r_k1], so
    # cat([left,right],-1).view(b,-1) @ W1
    #   == concat([left.reshape(b,20), right.reshape(b,20)], -1) @ vstack(W1_L, W1_R)
    # with W1_L = rows {4k,4k+1}, W1_R = rows {4k+2,4k+3}.
    idx = jnp.arange(D_IN)
    left_rows = idx[(idx % 4) < 2]
    right_rows = idx[(idx % 4) >= 2]
    w1k = jnp.concatenate([w1[left_rows], w1[right_rows]], axis=0).astype(matmul_dtype)
    w2k = w2.astype(matmul_dtype)
    # Zero-pad output head 6 -> 8 lanes (padded cols produce zeros; sliced off).
    w3k = jnp.pad(w3, ((0, 0), (0, D_OUT_PAD - D_OUT))).astype(matmul_dtype)
    b3k = jnp.pad(b3, ((0, 0), (0, D_OUT_PAD - D_OUT)))

    kernel_layout = (w1k, b1, w2k, b2, w3k, b3k)
    return torch_layout, kernel_layout


if __name__ == "__main__":
    key = jax.random.PRNGKey(0)
    k_params, k_left, k_right = jax.random.split(key, 3)

    torch_params, kernel_params = init_params(k_params)

    batch = 8
    track_left = jax.random.normal(k_left, (batch, N_TRACK, 2), jnp.float32)
    track_right = jax.random.normal(k_right, (batch, N_TRACK, 2), jnp.float32)

    out = mlp_planner_forward(track_left, track_right, kernel_params)
    out = jax.block_until_ready(out)
    assert out.shape == (batch, N_WAYPOINTS, 2)

    # (1) Precision-matched JAX reference (same bf16 operands, f32 accumulation).
    w1k, b1k, w2k, b2k, w3k, b3k = kernel_params
    xl = track_left.reshape(batch, D_SIDE)
    xr = track_right.reshape(batch, D_SIDE)
    xk = jnp.concatenate([xl, xr], axis=-1).astype(w1k.dtype)
    r = jnp.maximum(jnp.dot(xk, w1k, preferred_element_type=jnp.float32) + b1k, 0.0)
    r = jnp.maximum(jnp.dot(r.astype(w2k.dtype), w2k,
                            preferred_element_type=jnp.float32) + b2k, 0.0)
    r = jnp.dot(r.astype(w3k.dtype), w3k, preferred_element_type=jnp.float32) + b3k
    ref_matched = r[:, :D_OUT].reshape(batch, N_WAYPOINTS, 2)
    assert jnp.allclose(out, ref_matched, atol=1e-3, rtol=1e-3)

    # (2) Original f32 PyTorch math (cat + full W1); loose tol due to bf16 operands.
    w1, b1, w2, b2, w3, b3 = torch_params
    x = jnp.concatenate([track_left, track_right], axis=-1).reshape(batch, -1)
    ref = jnp.maximum(x @ w1 + b1, 0.0)
    ref = jnp.maximum(ref @ w2 + b2, 0.0)
    ref = (ref @ w3 + b3).reshape(batch, N_WAYPOINTS, 2)
    assert jnp.allclose(out, ref, atol=2e-2, rtol=2e-2)

    print("KERNEL_OK")
</pallas_src>

<mosaic_0001>
module attributes {stable_mosaic.version = 11 : i64} {
  func.func @_mlp_kernel(%arg0: i32, %arg1: memref<8x20xf32, #tpu.memory_space<vmem>>, %arg2: memref<8x20xf32, #tpu.memory_space<vmem>>, %arg3: memref<40x256xbf16, #tpu.memory_space<vmem>>, %arg4: memref<1x256xf32, #tpu.memory_space<vmem>>, %arg5: memref<256x128xbf16, #tpu.memory_space<vmem>>, %arg6: memref<1x128xf32, #tpu.memory_space<vmem>>, %arg7: memref<128x8xbf16, #tpu.memory_space<vmem>>, %arg8: memref<1x8xf32, #tpu.memory_space<vmem>>, %arg9: memref<8x8xf32, #tpu.memory_space<vmem>>) attributes {dimension_semantics = [#tpu.dimension_semantics<parallel>], iteration_bounds = array<i64: 1>, scalar_prefetch = 0 : i64, scratch_operands = 0 : i64, tpu.core_type = #tpu.core_type<tc>, window_params = [{transform_indices = @transform_0, window_bounds = array<i64: 8, 20>}, {transform_indices = @transform_1, window_bounds = array<i64: 8, 20>}, {pipeline_mode = #tpu.pipeline_mode<synchronous>, transform_indices = @transform_2, window_bounds = array<i64: 40, 256>}, {pipeline_mode = #tpu.pipeline_mode<synchronous>, transform_indices = @transform_3, window_bounds = array<i64: 1, 256>}, {pipeline_mode = #tpu.pipeline_mode<synchronous>, transform_indices = @transform_4, window_bounds = array<i64: 256, 128>}, {pipeline_mode = #tpu.pipeline_mode<synchronous>, transform_indices = @transform_5, window_bounds = array<i64: 1, 128>}, {pipeline_mode = #tpu.pipeline_mode<synchronous>, transform_indices = @transform_6, window_bounds = array<i64: 128, 8>}, {pipeline_mode = #tpu.pipeline_mode<synchronous>, transform_indices = @transform_7, window_bounds = array<i64: 1, 8>}, {transform_indices = @transform_8, window_bounds = array<i64: 8, 8>}]} {
    %c0 = arith.constant 0 : index
    %c0_0 = arith.constant 0 : index
    %0 = vector.load %arg1[%c0, %c0_0] : memref<8x20xf32, #tpu.memory_space<vmem>>, vector<8x20xf32>
    %c0_1 = arith.constant 0 : index
    %c0_2 = arith.constant 0 : index
    %1 = vector.load %arg2[%c0_1, %c0_2] : memref<8x20xf32, #tpu.memory_space<vmem>>, vector<8x20xf32>
    %2 = tpu.concatenate %0, %1 in 1 : vector<8x20xf32>, vector<8x20xf32> -> vector<8x40xf32>
    %3 = arith.truncf %2 : vector<8x40xf32> to vector<8x40xbf16>
    %c0_3 = arith.constant 0 : index
    %c0_4 = arith.constant 0 : index
    %4 = vector.load %arg3[%c0_3, %c0_4] : memref<40x256xbf16, #tpu.memory_space<vmem>>, vector<40x256xbf16>
    %cst = arith.constant dense<0.000000e+00> : vector<8x256xf32>
    %5 = tpu.matmul %3, %4, %cst {dimension_numbers = #tpu.dot_dimension_numbers<[1], [0], [0], [1], [0, 0, 1, 1], [], []>} : vector<8x40xbf16>, vector<40x256xbf16>, vector<8x256xf32> -> vector<8x256xf32>
    %c0_5 = arith.constant 0 : index
    %c0_6 = arith.constant 0 : index
    %6 = vector.load %arg4[%c0_5, %c0_6] : memref<1x256xf32, #tpu.memory_space<vmem>>, vector<1x256xf32>
    %7 = vector.broadcast %6 : vector<1x256xf32> to vector<8x256xf32>
    %8 = arith.addf %5, %7 : vector<8x256xf32>
    %cst_7 = arith.constant 0.000000e+00 : f32
    %9 = vector.broadcast %cst_7 : f32 to vector<8x256xf32>
    %10 = arith.maximumf %8, %9 : vector<8x256xf32>
    %11 = arith.truncf %10 : vector<8x256xf32> to vector<8x256xbf16>
    %c0_8 = arith.constant 0 : index
    %c0_9 = arith.constant 0 : index
    %12 = vector.load %arg5[%c0_8, %c0_9] : memref<256x128xbf16, #tpu.memory_space<vmem>>, vector<256x128xbf16>
    %cst_10 = arith.constant dense<0.000000e+00> : vector<8x128xf32>
    %13 = tpu.matmul %11, %12, %cst_10 {dimension_numbers = #tpu.dot_dimension_numbers<[1], [0], [0], [1], [0, 0, 1, 1], [], []>} : vector<8x256xbf16>, vector<256x128xbf16>, vector<8x128xf32> -> vector<8x128xf32>
    %c0_11 = arith.constant 0 : index
    %c0_12 = arith.constant 0 : index
    %14 = vector.load %arg6[%c0_11, %c0_12] : memref<1x128xf32, #tpu.memory_space<vmem>>, vector<1x128xf32>
    %15 = vector.broadcast %14 : vector<1x128xf32> to vector<8x128xf32>
    %16 = arith.addf %13, %15 : vector<8x128xf32>
    %cst_13 = arith.constant 0.000000e+00 : f32
    %17 = vector.broadcast %cst_13 : f32 to vector<8x128xf32>
    %18 = arith.maximumf %16, %17 : vector<8x128xf32>
    %19 = arith.truncf %18 : vector<8x128xf32> to vector<8x128xbf16>
    %c0_14 = arith.constant 0 : index
    %c0_15 = arith.constant 0 : index
    %20 = vector.load %arg7[%c0_14, %c0_15] : memref<128x8xbf16, #tpu.memory_space<vmem>>, vector<128x8xbf16>
    %cst_16 = arith.constant dense<0.000000e+00> : vector<8x8xf32>
    %21 = tpu.matmul %19, %20, %cst_16 {dimension_numbers = #tpu.dot_dimension_numbers<[1], [0], [0], [1], [0, 0, 1, 1], [], []>} : vector<8x128xbf16>, vector<128x8xbf16>, vector<8x8xf32> -> vector<8x8xf32>
    %c0_17 = arith.constant 0 : index
    %c0_18 = arith.constant 0 : index
    %22 = vector.load %arg8[%c0_17, %c0_18] : memref<1x8xf32, #tpu.memory_space<vmem>>, vector<1x8xf32>
    %23 = vector.broadcast %22 : vector<1x8xf32> to vector<8x8xf32>
    %24 = arith.addf %21, %23 : vector<8x8xf32>
    %c0_19 = arith.constant 0 : index
    %c0_20 = arith.constant 0 : index
    %25 = vector.load %arg9[%c0_19, %c0_20] : memref<8x8xf32, #tpu.memory_space<vmem>>, vector<8x8xf32>
    tpu.vector_store %arg9[%c0_19, %c0_20], %24 {strides = array<i32>} : memref<8x8xf32, #tpu.memory_space<vmem>>, vector<8x8xf32>,
    return
  }
  func.func @transform_0(%arg0: i32) -> (i32, i32) {
    %c0_i32 = arith.constant 0 : i32
    %c0_i32_0 = arith.constant 0 : i32
    return %arg0, %c0_i32 : i32, i32
  }
  func.func @transform_1(%arg0: i32) -> (i32, i32) {
    %c0_i32 = arith.constant 0 : i32
    %c0_i32_0 = arith.constant 0 : i32
    return %arg0, %c0_i32 : i32, i32
  }
  func.func @transform_2(%arg0: i32) -> (i32, i32) {
    %c0_i32 = arith.constant 0 : i32
    %c0_i32_0 = arith.constant 0 : i32
    %c0_i32_1 = arith.constant 0 : i32
    return %c0_i32, %c0_i32_0 : i32, i32
  }
  func.func @transform_3(%arg0: i32) -> (i32, i32) {
    %c0_i32 = arith.constant 0 : i32
    %c0_i32_0 = arith.constant 0 : i32
    %c0_i32_1 = arith.constant 0 : i32
    return %c0_i32, %c0_i32_0 : i32, i32
  }
  func.func @transform_4(%arg0: i32) -> (i32, i32) {
    %c0_i32 = arith.constant 0 : i32
    %c0_i32_0 = arith.constant 0 : i32
    %c0_i32_1 = arith.constant 0 : i32
    return %c0_i32, %c0_i32_0 : i32, i32
  }
  func.func @transform_5(%arg0: i32) -> (i32, i32) {
    %c0_i32 = arith.constant 0 : i32
    %c0_i32_0 = arith.constant 0 : i32
    %c0_i32_1 = arith.constant 0 : i32
    return %c0_i32, %c0_i32_0 : i32, i32
  }
  func.func @transform_6(%arg0: i32) -> (i32, i32) {
    %c0_i32 = arith.constant 0 : i32
    %c0_i32_0 = arith.constant 0 : i32
    %c0_i32_1 = arith.constant 0 : i32
    return %c0_i32, %c0_i32_0 : i32, i32
  }
  func.func @transform_7(%arg0: i32) -> (i32, i32) {
    %c0_i32 = arith.constant 0 : i32
    %c0_i32_0 = arith.constant 0 : i32
    %c0_i32_1 = arith.constant 0 : i32
    return %c0_i32, %c0_i32_0 : i32, i32
  }
  func.func @transform_8(%arg0: i32) -> (i32, i32) {
    %c0_i32 = arith.constant 0 : i32
    %c0_i32_0 = arith.constant 0 : i32
    return %arg0, %c0_i32 : i32, i32
  }
}

</mosaic_0001>

<bundles_post_ra>
// kernel: tpu_custom_call.1
= control target key start
LH: loop header
LB: loop body
LE: loop exit
PB: predicated region body
PF: predicated region fallthrough
CT: control target
= control target key end

     0   :  { %13 = vsyncpa [#allocation3], 0  ;;  %s761_s0 = inlined_call_operand.vmem [shape: f32[8,20], index: 0, kind: input, shape index: {}]   ;;  %s762_s1 = inlined_call_operand.vmem [shape: f32[8,20], index: 1, kind: input, shape index: {}]   ;;  %s763_s2 = inlined_call_operand.vmem [shape: bf16[40,256], index: 2, kind: input, shape index: {}]   ;;  %s764_s3 = inlined_call_operand.vmem [shape: f32[1,256], index: 3, kind: input, shape index: {}]   ;;  %s765_s4 = inlined_call_operand.hbm [shape: bf16[256,128], index: 4, kind: input, shape index: {}]   ;;  %s766_s5 = inlined_call_operand.vmem [shape: f32[1,128], index: 5, kind: input, shape index: {}]   ;;  %s767_s6 = inlined_call_operand.vmem [shape: bf16[128,8], index: 6, kind: input, shape index: {}]   ;;  %s768_s7 = inlined_call_operand.vmem [shape: f32[1,8], index: 7, kind: input, shape index: {}]   ;;  %s769_s8 = inlined_call_operand.hbm [shape: f32[8,8], index: 8, kind: output, shape index: {}]  }
   0x1   :  { %14 = vsyncpa [#allocation4], 0  ;;  %s630_s27 = smov [#allocation2]   ;;  %s582_s9 = scalar_lea.hbm %s765_s4, 2048 }
   0x2   :  { %s28_s28 = sshll.u32 %s630_s27, 4  ;;  %p583_p0 = scmp.ne.s32.totalorder %s765_s4, %s582_s9  ;;  %s29_s28 = int_to_ptr.vmem [resolvable:$true] %s28_s28 }
   0x3   :  { %p586_p1 = scmp.lt.u32.totalorder %s582_s9, %s765_s4 }
   0x5   :  { %p588_p2 = pnand %p586_p1, %p583_p0 }
   0x7   :  { %591 = shalt.err (!%p588_p2)
}
   0x8   :  { %s592_s14 = scalar_lea.vmem %s29_s28, 2048  ;;  %p597_p4 = scmp.lt.s32.totalorder %s29_s28, %s29_s28 }
   0x9   :  { %p593_p3 = scmp.ne.s32.totalorder %s29_s28, %s592_s14  ;;  %p598_p5 = scmp.lt.s32.totalorder %s592_s14, %s592_s14 }
   0xb   :  { %p599_p6 = por %p598_p5, %p597_p4 }
   0xd   :  { %p600_p7 = pnand %p599_p6, %p593_p3 }
   0xf   :  { %603 = shalt.err (!%p600_p7)
}
  0x10   :  { %s631_s15 = smov 64   ;;  %s632_s16 = smov 4  }
  0x11   :  { %34 = dma.hbm_to_vmem [thread:$0]  %s765_s4, 2048, %s29_s28, [#allocation3], %s631_s15, %s631_s15, %s632_s16  }
  0x12   :  { %626 = dma.done.wait [#allocation3], 2048  }
  0x13   :  { %627 = vsyncadd [#allocation3], 4294965248  ;;  %v633_v0 = vmov 0   ;;  %v46_v1 = vld [vmem:[%s762_s1] sm:$0xff]  ;;  %s634_s21 = smov 20   ;;  %vm100_vm0 = vcmask 1043456   ;;  %v61_v37 = vlaneseq }
  0x14   :  { %139 = vmatprep.mubr.bf16.mxu0 %v633_v0  ;;  %48 = vrot.lane.b32.xlu0 %v46_v1, %s634_s21  ;;  %v550_v2 = vld [vmem:[%s763_s2 + $0x4] ss:$8 sps:$4 sm:$0xff]   ;;  %v552_v3 = vld [vmem:[%s763_s2] ss:$8 sps:$4 sm:$0xff]   ;;  %v553_v4 = vld [vmem:[%s763_s2 + $0x14] ss:$8 sps:$4 sm:$0xff]  }
  0x15   :  { %107 = vmatprep.subr.bf16.mxu0 %v550_v2  ;;  %v555_v5 = vld [vmem:[%s763_s2 + $0x10] ss:$8 sps:$4 sm:$0xff]   ;;  %v58_v6 = vld [vmem:[%s763_s2 + $0x20] sm:$0xff]  ;;  %v560_v11 = vld [vmem:[#allocation2 + $0x48] sm:$0xff]   ;;  %vm51_vm1 = vcmask 162816   ;;  %vm96_vm2 = vcmask 326656  }
  0x16   :  { %108 = vmatpush1.bf16.msra.mxu0 %v552_v3  ;;  %v558_v7 = vld [vmem:[#allocation2 + $0x40] sm:$0xff]   ;;  %v462_v8 = vcombine.high %v58_v6, %v58_v6  ;;  %v461_v9 = vcombine.low %v58_v6, %v58_v6  ;;  %v561_v12 = vld [vmem:[#allocation2 + $0x8] sm:$0xff]   ;;  %v562_v13 = vld [vmem:[#allocation2 + $0x50] sm:$0xff]   ;;  %v635_v31 = vmov 0.0   ;;  %v62_v38 = vshrl.u32 %v61_v37, 7 }
  0x17   :  { %109 = vmatprep.subr.bf16.mxu0 %v553_v4  ;;  %v559_v10 = vld [vmem:[#allocation2] sm:$0xff]   ;;  %491 = vmatprep.subr.bf16.mxu1 %v558_v7  ;;  %v563_v15 = vld [vmem:[#allocation2 + $0x10] sm:$0xff]   ;;  %v564_v16 = vld [vmem:[#allocation2 + $0x58] sm:$0xff]   ;;  %vm636_vm3 = vmmov 0   ;;  %vm440_vm4 = vcmask 64512  }
  0x18   :  { %492 = vmatpush3.bf16.msra.mxu1 %v559_v10  ;;  %v102_v14 = vsel %vm100_vm0, %v461_v9, 0  ;;  %v565_v17 = vld [vmem:[#allocation2 + $0x18] sm:$0xff]   ;;  %v566_v18 = vld [vmem:[#allocation2 + $0x60] sm:$0xff]   ;;  %v568_v20 = vld [vmem:[#allocation2 + $0x68] sm:$0xff]   ;;  %v63_v39 = vsub.s32 0, %v62_v38  ;;  %v67_v41 = vsub.s32 1, %v62_v38 }
  0x19   :  { %493 = vmatprep.subr.bf16.mxu1 %v560_v11  ;;  %v567_v19 = vld [vmem:[#allocation2 + $0x20] sm:$0xff]   ;;  %v569_v21 = vld [vmem:[#allocation2 + $0x28] sm:$0xff]   ;;  %v570_v26 = vld [vmem:[#allocation2 + $0x70] sm:$0xff]  }
  0x1a   :  { %110 = vmatpush1.bf16.msra.mxu0 %v555_v5  ;;  %v45_v22 = vld [vmem:[%s761_s0] sm:$0xff]  ;;  %v571_v27 = vld [vmem:[#allocation2 + $0x30] sm:$0xff]   ;;  %v572_v28 = vld [vmem:[#allocation2 + $0x78] sm:$0xff]  }
  0x1b   :  { %463 = vmatprep.subr.msk.bf16.mxu0 %vm100_vm0, %v462_v8  ;;  %v573_v29 = vld [vmem:[#allocation2 + $0x38] sm:$0xff]   ;;  %v574_v30 = vld [vmem:[%s767_s6] sm:$0xff]   ;;  %v575_v32 = vld [vmem:[%s767_s6 + $0x8] sm:$0xff]  }
  0x1c   :  { %494 = vmatpush3.bf16.msra.mxu1 %v561_v12  ;;  %v576_v33 = vld [vmem:[%s767_s6 + $0x10] sm:$0xff]   ;;  %v577_v34 = vld [vmem:[%s767_s6 + $0x18] sm:$0xff]   ;;  %v578_v35 = vld [vmem:[%s767_s6 + $0x20] sm:$0xff]  }
  0x1d   :  { %495 = vmatprep.subr.bf16.mxu1 %v562_v13  ;;  %v579_v36 = vld [vmem:[%s767_s6 + $0x28] sm:$0xff]   ;;  %v59_v40 = vld [vmem:[%s764_s3] sm:$0x3]  ;;  %v580_v54 = vld [vmem:[%s767_s6 + $0x30] sm:$0xff]  }
  0x1e   :  { %112 = vmatpush1.bf16.msra.mxu0 %v102_v14  ;;  %v64_v42 = vrot.slane %v59_v40, %v63_v39  ;;  %v68_v43 = vrot.slane %v59_v40, %v67_v41  ;;  %v581_v55 = vld [vmem:[%s767_s6 + $0x38] sm:$0xff]   ;;  %v465_v57 = vld [vmem:[%s766_s5] ss:$0 sm:$0xff]  ;;  %s637_s6 = smov [#allocation5]  }
  0x1f   :  { %522 = vmatprep.subr.bf16.mxu0 %v635_v31  ;;  %v482_v1 = vld [vmem:[%s768_s7] ss:$0 sm:$0xff]  ;;  %s448_s28 = sshll.u32 %s637_s6, 4  ;;  %s449_s28 = int_to_ptr.vmem [resolvable:$true] %s448_s28 }
  0x20   :  { %496 = vmatpush3.bf16.msra.mxu1 %v563_v15  ;;  %s604_s5 = scalar_lea.vmem %s449_s28, 128  ;;  %p609_p9 = scmp.lt.s32.totalorder %s449_s28, %s449_s28 }
  0x21   :  { %497 = vmatprep.subr.bf16.mxu1 %v564_v16  ;;  %p605_p8 = scmp.ne.s32.totalorder %s449_s28, %s604_s5  ;;  %p610_p10 = scmp.lt.s32.totalorder %s604_s5, %s604_s5 }
  0x23   :  { %p611_p11 = por %p610_p10, %p609_p9 }
  0x24   :  { %498 = vmatpush3.bf16.msra.mxu1 %v565_v17 }
  0x25   :  { %499 = vmatprep.subr.bf16.mxu1 %v566_v18  ;;  %p612_p12 = pnand %p611_p11, %p605_p8 }
  0x28   :  { %500 = vmatpush3.bf16.msra.mxu1 %v567_v19 }
  0x29   :  { %501 = vmatprep.subr.bf16.mxu1 %v568_v20 }
  0x2c   :  { %502 = vmatpush3.bf16.msra.mxu1 %v569_v21 }
  0x2d   :  { %503 = vmatprep.subr.bf16.mxu1 %v570_v26 }
  0x30   :  { %504 = vmatpush3.bf16.msra.mxu1 %v571_v27 }
  0x31   :  { %505 = vmatprep.subr.bf16.mxu1 %v572_v28 }
  0x34   :  { %506 = vmatpush3.bf16.msra.mxu1 %v573_v29 }
  0x86   :  { %v49_v23 = vpop.permute.xlu0 %48 }
  0x87   :  { %v52_v24 = vsel %vm51_vm1, %v45_v22, %v49_v23 }
  0x88   :  { %v53_v25 = vpack.c.bf16 %v52_v24, %v52_v24 }
  0x8a   :  { %464 = vmatmul.mubr.msk.bf16.vlgmr.msra.gmra.mrb[0].mxu0 %vm96_vm2, %v53_v25 }
  0x8b   :  { %523 = vmatpush3.bf16.msra.mxu0 %v574_v30  ;;  %538 = vmatprep.mubr.msk.bf16.mxu0 %vm636_vm3, %v635_v31 }
  0x8c   :  { %524 = vmatprep.subr.bf16.mxu0 %v635_v31 }
  0x8f   :  { %525 = vmatpush3.bf16.msra.mxu0 %v575_v32 }
  0x90   :  { %526 = vmatprep.subr.bf16.mxu0 %v635_v31 }
  0x93   :  { %527 = vmatpush3.bf16.msra.mxu0 %v576_v33 }
  0x94   :  { %528 = vmatprep.subr.bf16.mxu0 %v635_v31 }
  0x97   :  { %529 = vmatpush3.bf16.msra.mxu0 %v577_v34 }
  0x98   :  { %530 = vmatprep.subr.bf16.mxu0 %v635_v31 }
  0x9b   :  { %531 = vmatpush3.bf16.msra.mxu0 %v578_v35 }
  0x9c   :  { %532 = vmatprep.subr.bf16.mxu0 %v635_v31 }
  0x9f   :  { %533 = vmatpush3.bf16.msra.mxu0 %v579_v36 }
  0xa0   :  { %534 = vmatprep.subr.bf16.mxu0 %v635_v31 }
  0xa3   :  { %535 = vmatpush3.bf16.msra.mxu0 %v580_v54 }
  0xa4   :  { %536 = vmatprep.subr.bf16.mxu0 %v635_v31 }
  0xa7   :  { %537 = vmatpush3.bf16.msra.mxu0 %v581_v55 }
 0x15d   :  { %v141_v44 = vpop.f32.mrb[0].mxu0 }
 0x15e   :  { %v142_v45 = vadd.f32 %v141_v44, %v64_v42  ;;  %v143_v46 = vpop.f32.mrb[1].mxu0 }
 0x15f   :  { %v144_v47 = vadd.f32 %v143_v46, %v68_v43  ;;  %v145_v48 = vpop.f32.mrb[2].mxu0 }
 0x160   :  { %v148_v49 = vmax.f32 %v142_v45, 0.0  ;;  %v146_v50 = vpop.f32.mrb[3].mxu0 }
 0x161   :  { %v149_v51 = vmax.f32 %v144_v47, 0.0 }
 0x162   :  { %v150_v53 = vpack.c.bf16 %v148_v49, %v148_v49 }
 0x163   :  { %v151_v52 = vpack.c.bf16 %v149_v51, %v149_v51 }
 0x165   :  { %319 = vmatprep.mubr.bf16.mxu1 %v151_v52 }
 0x166   :  { %320 = vmatmul.mubr.bf16.vlgmr.msra.gmra.mrb[0].mxu1 %v150_v53 }
 0x239   :  { %v507_v56 = vpop.f32.mrb[0].mxu1 }
 0x23a   :  { %v508_v58 = vpop.f32.mrb[1].mxu1 }
 0x23b   :  { %v509_v59 = vadd.f32 %v508_v58, %v507_v56  ;;  %v510_v60 = vpop.f32.mrb[2].mxu1 }
 0x23c   :  { %v511_v61 = vpop.f32.mrb[3].mxu1 }
 0x23d   :  { %v322_v62 = vadd.f32 %v509_v59, %v465_v57 }
 0x23f   :  { %v327_v63 = vmax.f32 %v322_v62, 0.0 }
 0x241   :  { %v328_v0 = vpack.c.bf16 %v327_v63, %v327_v63 }
 0x243   :  { %539 = vmatmul.mubr.bf16.vlgmr.msra.gmra.mrb[4].mxu0 %v328_v0 }
 0x316   :  { %v434_v2 = vpop.f32.mrb[4].mxu0 }
 0x317   :  { %v435_v3 = vadd.f32 %v482_v1, %v434_v2  ;;  %v540_v4 = vpop.f32.mrb[5].mxu0 }
 0x318   :  { %v437_v5 = vpop.f32.mrb[6].mxu0 }
 0x319   :  { %v541_v6 = vpop.f32.mrb[7].mxu0  ;;  %441 = vst.msk [vmem:[#allocation5] sm:$0xff] %vm440_vm4, %v435_v3 }
 0x31a   :  { %615 = shalt.err (!%p612_p12)
}
 0x31b   :  { %s616_s7 = scalar_lea.hbm %s769_s8, 128 }
 0x31c   :  { %p617_p13 = scmp.ne.s32.totalorder %s769_s8, %s616_s7  ;;  %p620_p0 = scmp.lt.u32.totalorder %s616_s7, %s769_s8 }
 0x31e   :  { %p622_p1 = pnand %p620_p0, %p617_p13 }
 0x320   :  { %625 = shalt.err (!%p622_p1)
}
 0x321   :  { %451 = dma.vmem_to_hbm [thread:$0]  %s449_s28, 128, %s769_s8, [#allocation4]  }
 0x322   :  { %628 = dma.done.wait [#allocation4], 128  }
 0x323   :  { %629 = vsyncadd [#allocation4], 4294967168 }
 0x324   :  { %455 = vsyncpa [#allocation3], 1 }
 0x325   :  { %456 = vsyncpa [#allocation4], 1 }

</bundles_post_ra>
